<compile_context>
chip_gen: v6e
topology: v6e:2x2x1
jax: 0.10.0
libtpu: 0.0.40
codegen_flags: <defaults>
</compile_context>

<pallas_src>
import functools
import math

import jax
import jax.numpy as jnp
from jax.experimental import pallas as pl
from jax.experimental.pallas import tpu as pltpu


# ---------------------------------------------------------------------------
# in-kernel helpers (traced into the kernel body, f32 math)
# ---------------------------------------------------------------------------
def _layernorm(h, w, b, eps=1e-5):
    mu = jnp.mean(h, axis=-1, keepdims=True)
    var = jnp.mean(jnp.square(h - mu), axis=-1, keepdims=True)
    return (h - mu) * jax.lax.rsqrt(var + eps) * w + b


def _gelu_tanh(h):
    c = math.sqrt(2.0 / math.pi)
    return 0.5 * h * (1.0 + jnp.tanh(c * (h + 0.044715 * h * h * h)))


# ---------------------------------------------------------------------------
# Pallas kernel: one (batch, query-tile) slab of the transformer block
# ---------------------------------------------------------------------------
def block_kernel(xq_ref, xf_ref,
                 ln1_w_ref, ln1_b_ref,
                 w_attn_ref, b_attn_ref,
                 w_aproj_ref, b_aproj_ref,
                 ln2_w_ref, ln2_b_ref,
                 w_fc_ref, b_fc_ref,
                 w_mproj_ref, b_mproj_ref,
                 out_ref,
                 y_scratch,
                 *, n_head, mlp_chunk):
    qi = pl.program_id(1)

    x_q = xq_ref[0].astype(jnp.float32)          # (TQ, C) query rows
    x_f = xf_ref[0].astype(jnp.float32)          # (T,  C) full sequence (for K/V)
    TQ, C = x_q.shape
    T = x_f.shape[0]
    D = C // n_head
    scale = 1.0 / math.sqrt(D)

    ln1_w = ln1_w_ref[...]
    ln1_b = ln1_b_ref[...]

    # ---------------- attention branch ----------------
    # LayerNorm in f32, bf16 operands into the MXU.
    h_q = _layernorm(x_q, ln1_w, ln1_b).astype(jnp.bfloat16)
    h_f = _layernorm(x_f, ln1_w, ln1_b).astype(jnp.bfloat16)

    # separate Q / K / V projections against column slices of w_attn
    q = (jnp.dot(h_q, w_attn_ref[:, 0 * C:1 * C], preferred_element_type=jnp.float32)
         + b_attn_ref[:, 0 * C:1 * C])
    k = (jnp.dot(h_f, w_attn_ref[:, 1 * C:2 * C], preferred_element_type=jnp.float32)
         + b_attn_ref[:, 1 * C:2 * C])
    v = (jnp.dot(h_f, w_attn_ref[:, 2 * C:3 * C], preferred_element_type=jnp.float32)
         + b_attn_ref[:, 2 * C:3 * C])

    q_bf = q.astype(jnp.bfloat16)                # (TQ, C)
    k_bf = k.astype(jnp.bfloat16)                # (T,  C)
    v_bf = v.astype(jnp.bfloat16)                # (T,  C)

    # additive causal mask for this query tile, shared across heads
    row = qi * TQ + jax.lax.broadcasted_iota(jnp.int32, (TQ, T), 0)
    col = jax.lax.broadcasted_iota(jnp.int32, (TQ, T), 1)
    add_mask = jnp.where(col <= row, 0.0, -1e30).astype(jnp.float32)

    nt_dims = (((1,), (1,)), ((), ()))           # contract last dims (q @ k^T, no transpose op)
    for hh in range(n_head):                     # static, unrolled
        sl = slice(hh * D, (hh + 1) * D)
        s = jax.lax.dot_general(q_bf[:, sl], k_bf[:, sl], nt_dims,
                                preferred_element_type=jnp.float32) * scale
        s = s + add_mask
        m = jnp.max(s, axis=-1, keepdims=True)
        p = jnp.exp(s - m)
        denom = jnp.sum(p, axis=-1, keepdims=True)
        p = p * pl.reciprocal(denom, approx=True)
        o_h = jnp.dot(p.astype(jnp.bfloat16), v_bf[:, sl],
                      preferred_element_type=jnp.float32)
        y_scratch[:, sl] = o_h                   # write head output into (TQ, C) scratch

    y = y_scratch[...].astype(jnp.bfloat16)      # (TQ, C)
    att = (jnp.dot(y, w_aproj_ref[...], preferred_element_type=jnp.float32)
           + b_aproj_ref[...])
    x1 = x_q + att                               # residual 1

    # ---------------- MLP branch (hidden dim processed in chunks) ----------------
    h2 = _layernorm(x1, ln2_w_ref[...], ln2_b_ref[...]).astype(jnp.bfloat16)
    hidden = w_fc_ref.shape[1]                   # 4C
    acc = jnp.zeros((TQ, C), jnp.float32)
    for c0 in range(0, hidden, mlp_chunk):
        c1 = c0 + mlp_chunk
        fc = (jnp.dot(h2, w_fc_ref[:, c0:c1], preferred_element_type=jnp.float32)
              + b_fc_ref[:, c0:c1])
        g = _gelu_tanh(fc).astype(jnp.bfloat16)
        acc = acc + jnp.dot(g, w_mproj_ref[c0:c1, :],
                            preferred_element_type=jnp.float32)
    x2 = x1 + acc + b_mproj_ref[...]             # residual 2

    out_ref[0] = x2.astype(out_ref.dtype)


# ---------------------------------------------------------------------------
# wrapper
# ---------------------------------------------------------------------------
def transformer_block(x, params, n_head, *, tq=None):
    B, T, C = x.shape
    (ln1_w, ln1_b, w_attn, b_attn, w_aproj, b_aproj,
     ln2_w, ln2_b, w_fc, b_fc, w_mproj, b_mproj) = params

    # bf16 weights for the MXU (f32 accumulation inside the kernel); biases/LN stay f32.
    kernel_params = (ln1_w, ln1_b,
                     w_attn.astype(jnp.bfloat16), b_attn,
                     w_aproj.astype(jnp.bfloat16), b_aproj,
                     ln2_w, ln2_b,
                     w_fc.astype(jnp.bfloat16), b_fc,
                     w_mproj.astype(jnp.bfloat16), b_mproj)

    if tq is None:
        tq = T if T <= 256 else 256
    assert T % tq == 0, "sequence length must be divisible by the query tile"
    nq = T // tq

    mlp_chunk = 4 * C if 4 * C <= 512 else 512
    assert (4 * C) % mlp_chunk == 0

    def full_spec(p):
        zeros = (0,) * p.ndim
        return pl.BlockSpec(p.shape, lambda b, qi: zeros)

    grid_spec = pltpu.PrefetchScalarGridSpec(
        num_scalar_prefetch=0,
        grid=(B, nq),
        in_specs=[pl.BlockSpec((1, tq, C), lambda b, qi: (b, qi, 0)),   # query tile
                  pl.BlockSpec((1, T, C), lambda b, qi: (b, 0, 0))]     # full sequence (K/V)
                 + [full_spec(p) for p in kernel_params],
        out_specs=pl.BlockSpec((1, tq, C), lambda b, qi: (b, qi, 0)),
        scratch_shapes=[pltpu.VMEM((tq, C), jnp.float32)],
    )

    # explicit scoped-VMEM budget: double-buffered weights + activation slabs + margin,
    # clamped below the v7x physical limit (64 MiB).
    weight_bytes = sum(int(p.size) * p.dtype.itemsize for p in kernel_params)
    act_bytes = 4 * (4 * tq * C + 6 * T * C + tq * T + tq * mlp_chunk)
    vmem_limit = int(min(max(2 * weight_bytes + 2 * act_bytes + (8 << 20), 32 << 20),
                         60 << 20))

    kernel = functools.partial(block_kernel, n_head=n_head, mlp_chunk=mlp_chunk)
    return pl.pallas_call(
        kernel,
        out_shape=jax.ShapeDtypeStruct((B, T, C), x.dtype),
        grid_spec=grid_spec,
        compiler_params=pltpu.CompilerParams(
            dimension_semantics=("parallel", "parallel"),
            vmem_limit_bytes=vmem_limit),
    )(x, x, *kernel_params)


# ---------------------------------------------------------------------------
# deterministic parameter init (shapes match the PyTorch module's __init__)
# ---------------------------------------------------------------------------
def init_params(key, C):
    ks = jax.random.split(key, 6)
    s = 0.02
    ln1_w = jnp.ones((1, C), jnp.float32)
    ln1_b = jnp.zeros((1, C), jnp.float32)
    w_attn = s * jax.random.normal(ks[0], (C, 3 * C), jnp.float32)
    b_attn = s * jax.random.normal(ks[1], (1, 3 * C), jnp.float32)
    w_aproj = s * jax.random.normal(ks[2], (C, C), jnp.float32)
    b_aproj = jnp.zeros((1, C), jnp.float32)
    ln2_w = jnp.ones((1, C), jnp.float32)
    ln2_b = jnp.zeros((1, C), jnp.float32)
    w_fc = s * jax.random.normal(ks[3], (C, 4 * C), jnp.float32)
    b_fc = s * jax.random.normal(ks[4], (1, 4 * C), jnp.float32)
    w_mproj = s * jax.random.normal(ks[5], (4 * C, C), jnp.float32)
    b_mproj = jnp.zeros((1, C), jnp.float32)
    return (ln1_w, ln1_b, w_attn, b_attn, w_aproj, b_aproj,
            ln2_w, ln2_b, w_fc, b_fc, w_mproj, b_mproj)


# ---------------------------------------------------------------------------
# plain-JAX f32 reference (for a correctness sanity check)
# ---------------------------------------------------------------------------
def block_ref(x, params, n_head):
    (ln1_w, ln1_b, w_attn, b_attn, w_aproj, b_aproj,
     ln2_w, ln2_b, w_fc, b_fc, w_mproj, b_mproj) = params
    B, T, C = x.shape
    D = C // n_head

    def ln(h, w, b):
        mu = jnp.mean(h, axis=-1, keepdims=True)
        var = jnp.mean(jnp.square(h - mu), axis=-1, keepdims=True)
        return (h - mu) * jax.lax.rsqrt(var + 1e-5) * w + b

    h = ln(x, ln1_w, ln1_b)
    qkv = h @ w_attn + b_attn
    q, k, v = jnp.split(qkv, 3, axis=-1)
    q = q.reshape(B, T, n_head, D).transpose(0, 2, 1, 3)
    k = k.reshape(B, T, n_head, D).transpose(0, 2, 1, 3)
    v = v.reshape(B, T, n_head, D).transpose(0, 2, 1, 3)
    s = jnp.einsum('bhtd,bhsd->bhts', q, k) / math.sqrt(D)
    mask = jnp.tril(jnp.ones((T, T), bool))
    s = jnp.where(mask, s, -jnp.inf)
    p = jax.nn.softmax(s, axis=-1)
    y = jnp.einsum('bhts,bhsd->bhtd', p, v)
    y = y.transpose(0, 2, 1, 3).reshape(B, T, C)
    x = x + (y @ w_aproj + b_aproj)

    h = ln(x, ln2_w, ln2_b)
    h = h @ w_fc + b_fc
    c = math.sqrt(2.0 / math.pi)
    h = 0.5 * h * (1.0 + jnp.tanh(c * (h + 0.044715 * h ** 3)))
    x = x + (h @ w_mproj + b_mproj)
    return x


if __name__ == "__main__":
    B, T, C, n_head = 2, 8, 32, 4
    key = jax.random.PRNGKey(0)
    kx, kp = jax.random.split(key)
    x = jax.random.normal(kx, (B, T, C), jnp.float32)
    params = init_params(kp, C)

    out = transformer_block(x, params, n_head)
    out = jax.block_until_ready(out)

    ref = block_ref(x, params, n_head)
    assert out.shape == (B, T, C)
    # bf16 matmul operands (f32 accumulation) -> looser tolerance vs. the f32 reference
    assert jnp.allclose(out, ref, rtol=2e-2, atol=2e-2), "mismatch vs reference"

    print("KERNEL_OK")
</pallas_src>

<mosaic_0001>
module attributes {stable_mosaic.version = 11 : i64} {
  func.func @block_kernel(%arg0: i32, %arg1: i32, %arg2: memref<1x8x32xf32, #tpu.memory_space<vmem>>, %arg3: memref<1x8x32xf32, #tpu.memory_space<vmem>>, %arg4: memref<1x32xf32, #tpu.memory_space<vmem>>, %arg5: memref<1x32xf32, #tpu.memory_space<vmem>>, %arg6: memref<32x96xbf16, #tpu.memory_space<vmem>>, %arg7: memref<1x96xf32, #tpu.memory_space<vmem>>, %arg8: memref<32x32xbf16, #tpu.memory_space<vmem>>, %arg9: memref<1x32xf32, #tpu.memory_space<vmem>>, %arg10: memref<1x32xf32, #tpu.memory_space<vmem>>, %arg11: memref<1x32xf32, #tpu.memory_space<vmem>>, %arg12: memref<32x128xbf16, #tpu.memory_space<vmem>>, %arg13: memref<1x128xf32, #tpu.memory_space<vmem>>, %arg14: memref<128x32xbf16, #tpu.memory_space<vmem>>, %arg15: memref<1x32xf32, #tpu.memory_space<vmem>>, %arg16: memref<1x8x32xf32, #tpu.memory_space<vmem>>, %arg17: memref<8x32xf32, #tpu.memory_space<vmem>>) attributes {dimension_semantics = [#tpu.dimension_semantics<parallel>, #tpu.dimension_semantics<parallel>], iteration_bounds = array<i64: 2, 1>, scalar_prefetch = 0 : i64, scratch_operands = 1 : i64, tpu.core_type = #tpu.core_type<tc>, window_params = [{transform_indices = @transform_0, window_bounds = array<i64: 1, 8, 32>}, {transform_indices = @transform_1, window_bounds = array<i64: 1, 8, 32>}, {pipeline_mode = #tpu.pipeline_mode<synchronous>, transform_indices = @transform_2, window_bounds = array<i64: 1, 32>}, {pipeline_mode = #tpu.pipeline_mode<synchronous>, transform_indices = @transform_3, window_bounds = array<i64: 1, 32>}, {pipeline_mode = #tpu.pipeline_mode<synchronous>, transform_indices = @transform_4, window_bounds = array<i64: 32, 96>}, {pipeline_mode = #tpu.pipeline_mode<synchronous>, transform_indices = @transform_5, window_bounds = array<i64: 1, 96>}, {pipeline_mode = #tpu.pipeline_mode<synchronous>, transform_indices = @transform_6, window_bounds = array<i64: 32, 32>}, {pipeline_mode = #tpu.pipeline_mode<synchronous>, transform_indices = @transform_7, window_bounds = array<i64: 1, 32>}, {pipeline_mode = #tpu.pipeline_mode<synchronous>, transform_indices = @transform_8, window_bounds = array<i64: 1, 32>}, {pipeline_mode = #tpu.pipeline_mode<synchronous>, transform_indices = @transform_9, window_bounds = array<i64: 1, 32>}, {pipeline_mode = #tpu.pipeline_mode<synchronous>, transform_indices = @transform_10, window_bounds = array<i64: 32, 128>}, {pipeline_mode = #tpu.pipeline_mode<synchronous>, transform_indices = @transform_11, window_bounds = array<i64: 1, 128>}, {pipeline_mode = #tpu.pipeline_mode<synchronous>, transform_indices = @transform_12, window_bounds = array<i64: 128, 32>}, {pipeline_mode = #tpu.pipeline_mode<synchronous>, transform_indices = @transform_13, window_bounds = array<i64: 1, 32>}, {transform_indices = @transform_14, window_bounds = array<i64: 1, 8, 32>}]} {
    %c0 = arith.constant 0 : index
    %c0_0 = arith.constant 0 : index
    %c0_1 = arith.constant 0 : index
    %0 = vector.load %arg2[%c0, %c0_0, %c0_1] : memref<1x8x32xf32, #tpu.memory_space<vmem>>, vector<1x8x32xf32>
    %1 = vector.shape_cast %0 : vector<1x8x32xf32> to vector<8x32xf32>
    %c0_2 = arith.constant 0 : index
    %c0_3 = arith.constant 0 : index
    %c0_4 = arith.constant 0 : index
    %2 = vector.load %arg3[%c0_2, %c0_3, %c0_4] : memref<1x8x32xf32, #tpu.memory_space<vmem>>, vector<1x8x32xf32>
    %3 = vector.shape_cast %2 : vector<1x8x32xf32> to vector<8x32xf32>
    %c0_5 = arith.constant 0 : index
    %c0_6 = arith.constant 0 : index
    %4 = vector.load %arg4[%c0_5, %c0_6] : memref<1x32xf32, #tpu.memory_space<vmem>>, vector<1x32xf32>
    %c0_7 = arith.constant 0 : index
    %c0_8 = arith.constant 0 : index
    %5 = vector.load %arg5[%c0_7, %c0_8] : memref<1x32xf32, #tpu.memory_space<vmem>>, vector<1x32xf32>
    %cst = arith.constant dense<0.000000e+00> : vector<8xf32>
    %6 = vector.multi_reduction <add>, %1, %cst [1] : vector<8x32xf32> to vector<8xf32>
    %7 = vector.shape_cast %6 : vector<8xf32> to vector<8x1xf32>
    %cst_9 = arith.constant 3.200000e+01 : f32
    %8 = vector.broadcast %cst_9 : f32 to vector<8x1xf32>
    %9 = arith.divf %7, %8 : vector<8x1xf32>
    %10 = vector.broadcast %9 : vector<8x1xf32> to vector<8x32xf32>
    %11 = arith.subf %1, %10 : vector<8x32xf32>
    %12 = arith.mulf %11, %11 : vector<8x32xf32>
    %cst_10 = arith.constant dense<0.000000e+00> : vector<8xf32>
    %13 = vector.multi_reduction <add>, %12, %cst_10 [1] : vector<8x32xf32> to vector<8xf32>
    %14 = vector.shape_cast %13 : vector<8xf32> to vector<8x1xf32>
    %cst_11 = arith.constant 3.200000e+01 : f32
    %15 = vector.broadcast %cst_11 : f32 to vector<8x1xf32>
    %16 = arith.divf %14, %15 : vector<8x1xf32>
    %17 = vector.broadcast %9 : vector<8x1xf32> to vector<8x32xf32>
    %18 = arith.subf %1, %17 : vector<8x32xf32>
    %cst_12 = arith.constant 9.99999974E-6 : f32
    %19 = vector.broadcast %cst_12 : f32 to vector<8x1xf32>
    %20 = arith.addf %16, %19 : vector<8x1xf32>
    %21 = math.rsqrt %20 : vector<8x1xf32>
    %22 = vector.broadcast %21 : vector<8x1xf32> to vector<8x32xf32>
    %23 = arith.mulf %18, %22 : vector<8x32xf32>
    %24 = vector.broadcast %4 : vector<1x32xf32> to vector<8x32xf32>
    %25 = arith.mulf %23, %24 : vector<8x32xf32>
    %26 = vector.broadcast %5 : vector<1x32xf32> to vector<8x32xf32>
    %27 = arith.addf %25, %26 : vector<8x32xf32>
    %28 = arith.truncf %27 : vector<8x32xf32> to vector<8x32xbf16>
    %cst_13 = arith.constant dense<0.000000e+00> : vector<8xf32>
    %29 = vector.multi_reduction <add>, %3, %cst_13 [1] : vector<8x32xf32> to vector<8xf32>
    %30 = vector.shape_cast %29 : vector<8xf32> to vector<8x1xf32>
    %cst_14 = arith.constant 3.200000e+01 : f32
    %31 = vector.broadcast %cst_14 : f32 to vector<8x1xf32>
    %32 = arith.divf %30, %31 : vector<8x1xf32>
    %33 = vector.broadcast %32 : vector<8x1xf32> to vector<8x32xf32>
    %34 = arith.subf %3, %33 : vector<8x32xf32>
    %35 = arith.mulf %34, %34 : vector<8x32xf32>
    %cst_15 = arith.constant dense<0.000000e+00> : vector<8xf32>
    %36 = vector.multi_reduction <add>, %35, %cst_15 [1] : vector<8x32xf32> to vector<8xf32>
    %37 = vector.shape_cast %36 : vector<8xf32> to vector<8x1xf32>
    %cst_16 = arith.constant 3.200000e+01 : f32
    %38 = vector.broadcast %cst_16 : f32 to vector<8x1xf32>
    %39 = arith.divf %37, %38 : vector<8x1xf32>
    %40 = vector.broadcast %32 : vector<8x1xf32> to vector<8x32xf32>
    %41 = arith.subf %3, %40 : vector<8x32xf32>
    %cst_17 = arith.constant 9.99999974E-6 : f32
    %42 = vector.broadcast %cst_17 : f32 to vector<8x1xf32>
    %43 = arith.addf %39, %42 : vector<8x1xf32>
    %44 = math.rsqrt %43 : vector<8x1xf32>
    %45 = vector.broadcast %44 : vector<8x1xf32> to vector<8x32xf32>
    %46 = arith.mulf %41, %45 : vector<8x32xf32>
    %47 = vector.broadcast %4 : vector<1x32xf32> to vector<8x32xf32>
    %48 = arith.mulf %46, %47 : vector<8x32xf32>
    %49 = vector.broadcast %5 : vector<1x32xf32> to vector<8x32xf32>
    %50 = arith.addf %48, %49 : vector<8x32xf32>
    %51 = arith.truncf %50 : vector<8x32xf32> to vector<8x32xbf16>
    %c0_18 = arith.constant 0 : index
    %c0_19 = arith.constant 0 : index
    %52 = vector.load %arg6[%c0_18, %c0_19] : memref<32x96xbf16, #tpu.memory_space<vmem>>, vector<32x32xbf16>
    %cst_20 = arith.constant dense<0.000000e+00> : vector<8x32xf32>
    %53 = tpu.matmul %28, %52, %cst_20 {dimension_numbers = #tpu.dot_dimension_numbers<[1], [0], [0], [1], [0, 0, 1, 1], [], []>} : vector<8x32xbf16>, vector<32x32xbf16>, vector<8x32xf32> -> vector<8x32xf32>
    %c0_21 = arith.constant 0 : index
    %c0_22 = arith.constant 0 : index
    %54 = vector.load %arg7[%c0_21, %c0_22] : memref<1x96xf32, #tpu.memory_space<vmem>>, vector<1x32xf32>
    %55 = vector.broadcast %54 : vector<1x32xf32> to vector<8x32xf32>
    %56 = arith.addf %53, %55 : vector<8x32xf32>
    %c0_23 = arith.constant 0 : index
    %c32 = arith.constant 32 : index
    %57 = vector.load %arg6[%c0_23, %c32] : memref<32x96xbf16, #tpu.memory_space<vmem>>, vector<32x32xbf16>
    %cst_24 = arith.constant dense<0.000000e+00> : vector<8x32xf32>
    %58 = tpu.matmul %51, %57, %cst_24 {dimension_numbers = #tpu.dot_dimension_numbers<[1], [0], [0], [1], [0, 0, 1, 1], [], []>} : vector<8x32xbf16>, vector<32x32xbf16>, vector<8x32xf32> -> vector<8x32xf32>
    %c0_25 = arith.constant 0 : index
    %c32_26 = arith.constant 32 : index
    %59 = vector.load %arg7[%c0_25, %c32_26] : memref<1x96xf32, #tpu.memory_space<vmem>>, vector<1x32xf32>
    %60 = vector.broadcast %59 : vector<1x32xf32> to vector<8x32xf32>
    %61 = arith.addf %58, %60 : vector<8x32xf32>
    %c0_27 = arith.constant 0 : index
    %c64 = arith.constant 64 : index
    %62 = vector.load %arg6[%c0_27, %c64] : memref<32x96xbf16, #tpu.memory_space<vmem>>, vector<32x32xbf16>
    %cst_28 = arith.constant dense<0.000000e+00> : vector<8x32xf32>
    %63 = tpu.matmul %51, %62, %cst_28 {dimension_numbers = #tpu.dot_dimension_numbers<[1], [0], [0], [1], [0, 0, 1, 1], [], []>} : vector<8x32xbf16>, vector<32x32xbf16>, vector<8x32xf32> -> vector<8x32xf32>
    %c0_29 = arith.constant 0 : index
    %c64_30 = arith.constant 64 : index
    %64 = vector.load %arg7[%c0_29, %c64_30] : memref<1x96xf32, #tpu.memory_space<vmem>>, vector<1x32xf32>
    %65 = vector.broadcast %64 : vector<1x32xf32> to vector<8x32xf32>
    %66 = arith.addf %63, %65 : vector<8x32xf32>
    %67 = arith.truncf %56 : vector<8x32xf32> to vector<8x32xbf16>
    %68 = arith.truncf %61 : vector<8x32xf32> to vector<8x32xbf16>
    %69 = arith.truncf %66 : vector<8x32xf32> to vector<8x32xbf16>
    %c8_i32 = arith.constant 8 : i32
    %70 = arith.muli %arg1, %c8_i32 : i32
    %71 = tpu.iota {dimensions = array<i32: 0>} : vector<8x8xi32>
    %72 = vector.broadcast %70 : i32 to vector<8x8xi32>
    %73 = arith.addi %72, %71 : vector<8x8xi32>
    %74 = tpu.iota {dimensions = array<i32: 1>} : vector<8x8xi32>
    %75 = arith.cmpi sle, %74, %73 : vector<8x8xi32>
    %cst_31 = arith.constant 0.000000e+00 : f32
    %cst_32 = arith.constant -1.000000e+30 : f32
    %76 = vector.broadcast %cst_31 : f32 to vector<8x8xf32>
    %77 = vector.broadcast %cst_32 : f32 to vector<8x8xf32>
    %78 = arith.select %75, %76, %77 : vector<8x8xi1>, vector<8x8xf32>
    %79 = vector.extract_strided_slice %67 {offsets = [0, 0], sizes = [8, 8], strides = [1, 1]} : vector<8x32xbf16> to vector<8x8xbf16>
    %80 = vector.extract_strided_slice %68 {offsets = [0, 0], sizes = [8, 8], strides = [1, 1]} : vector<8x32xbf16> to vector<8x8xbf16>
    %cst_33 = arith.constant dense<0.000000e+00> : vector<8x8xf32>
    %81 = tpu.matmul %79, %80, %cst_33 {dimension_numbers = #tpu.dot_dimension_numbers<[1], [1], [0], [0], [0, 0, 1, 0], [], []>} : vector<8x8xbf16>, vector<8x8xbf16>, vector<8x8xf32> -> vector<8x8xf32>
    %cst_34 = arith.constant 0.353553385 : f32
    %82 = vector.broadcast %cst_34 : f32 to vector<8x8xf32>
    %83 = arith.mulf %81, %82 : vector<8x8xf32>
    %84 = arith.addf %83, %78 : vector<8x8xf32>
    %cst_35 = arith.constant dense<0xFF800000> : vector<8xf32>
    %85 = vector.multi_reduction <maximumf>, %84, %cst_35 [1] : vector<8x8xf32> to vector<8xf32>
    %86 = vector.shape_cast %85 : vector<8xf32> to vector<8x1xf32>
    %87 = vector.broadcast %86 : vector<8x1xf32> to vector<8x8xf32>
    %88 = arith.subf %84, %87 : vector<8x8xf32>
    %89 = math.exp %88 : vector<8x8xf32>
    %cst_36 = arith.constant dense<0.000000e+00> : vector<8xf32>
    %90 = vector.multi_reduction <add>, %89, %cst_36 [1] : vector<8x8xf32> to vector<8xf32>
    %91 = vector.shape_cast %90 : vector<8xf32> to vector<8x1xf32>
    %92 = tpu.reciprocal %91 {approx = true} : vector<8x1xf32> -> vector<8x1xf32>
    %93 = vector.broadcast %92 : vector<8x1xf32> to vector<8x8xf32>
    %94 = arith.mulf %89, %93 : vector<8x8xf32>
    %95 = arith.truncf %94 : vector<8x8xf32> to vector<8x8xbf16>
    %96 = vector.extract_strided_slice %69 {offsets = [0, 0], sizes = [8, 8], strides = [1, 1]} : vector<8x32xbf16> to vector<8x8xbf16>
    %cst_37 = arith.constant dense<0.000000e+00> : vector<8x8xf32>
    %97 = tpu.matmul %95, %96, %cst_37 {dimension_numbers = #tpu.dot_dimension_numbers<[1], [0], [0], [1], [0, 0, 1, 1], [], []>} : vector<8x8xbf16>, vector<8x8xbf16>, vector<8x8xf32> -> vector<8x8xf32>
    %c0_38 = arith.constant 0 : index
    %c0_39 = arith.constant 0 : index
    %98 = vector.load %arg17[%c0_38, %c0_39] : memref<8x32xf32, #tpu.memory_space<vmem>>, vector<8x8xf32>
    tpu.vector_store %arg17[%c0_38, %c0_39], %97 {strides = array<i32>} : memref<8x32xf32, #tpu.memory_space<vmem>>, vector<8x8xf32>,
    %99 = vector.extract_strided_slice %67 {offsets = [0, 8], sizes = [8, 8], strides = [1, 1]} : vector<8x32xbf16> to vector<8x8xbf16>
    %100 = vector.extract_strided_slice %68 {offsets = [0, 8], sizes = [8, 8], strides = [1, 1]} : vector<8x32xbf16> to vector<8x8xbf16>
    %cst_40 = arith.constant dense<0.000000e+00> : vector<8x8xf32>
    %101 = tpu.matmul %99, %100, %cst_40 {dimension_numbers = #tpu.dot_dimension_numbers<[1], [1], [0], [0], [0, 0, 1, 0], [], []>} : vector<8x8xbf16>, vector<8x8xbf16>, vector<8x8xf32> -> vector<8x8xf32>
    %cst_41 = arith.constant 0.353553385 : f32
    %102 = vector.broadcast %cst_41 : f32 to vector<8x8xf32>
    %103 = arith.mulf %101, %102 : vector<8x8xf32>
    %104 = arith.addf %103, %78 : vector<8x8xf32>
    %cst_42 = arith.constant dense<0xFF800000> : vector<8xf32>
    %105 = vector.multi_reduction <maximumf>, %104, %cst_42 [1] : vector<8x8xf32> to vector<8xf32>
    %106 = vector.shape_cast %105 : vector<8xf32> to vector<8x1xf32>
    %107 = vector.broadcast %106 : vector<8x1xf32> to vector<8x8xf32>
    %108 = arith.subf %104, %107 : vector<8x8xf32>
    %109 = math.exp %108 : vector<8x8xf32>
    %cst_43 = arith.constant dense<0.000000e+00> : vector<8xf32>
    %110 = vector.multi_reduction <add>, %109, %cst_43 [1] : vector<8x8xf32> to vector<8xf32>
    %111 = vector.shape_cast %110 : vector<8xf32> to vector<8x1xf32>
    %112 = tpu.reciprocal %111 {approx = true} : vector<8x1xf32> -> vector<8x1xf32>
    %113 = vector.broadcast %112 : vector<8x1xf32> to vector<8x8xf32>
    %114 = arith.mulf %109, %113 : vector<8x8xf32>
    %115 = arith.truncf %114 : vector<8x8xf32> to vector<8x8xbf16>
    %116 = vector.extract_strided_slice %69 {offsets = [0, 8], sizes = [8, 8], strides = [1, 1]} : vector<8x32xbf16> to vector<8x8xbf16>
    %cst_44 = arith.constant dense<0.000000e+00> : vector<8x8xf32>
    %117 = tpu.matmul %115, %116, %cst_44 {dimension_numbers = #tpu.dot_dimension_numbers<[1], [0], [0], [1], [0, 0, 1, 1], [], []>} : vector<8x8xbf16>, vector<8x8xbf16>, vector<8x8xf32> -> vector<8x8xf32>
    %c0_45 = arith.constant 0 : index
    %c8 = arith.constant 8 : index
    %118 = vector.load %arg17[%c0_45, %c8] : memref<8x32xf32, #tpu.memory_space<vmem>>, vector<8x8xf32>
    tpu.vector_store %arg17[%c0_45, %c8], %117 {strides = array<i32>} : memref<8x32xf32, #tpu.memory_space<vmem>>, vector<8x8xf32>,
    %119 = vector.extract_strided_slice %67 {offsets = [0, 16], sizes = [8, 8], strides = [1, 1]} : vector<8x32xbf16> to vector<8x8xbf16>
    %120 = vector.extract_strided_slice %68 {offsets = [0, 16], sizes = [8, 8], strides = [1, 1]} : vector<8x32xbf16> to vector<8x8xbf16>
    %cst_46 = arith.constant dense<0.000000e+00> : vector<8x8xf32>
    %121 = tpu.matmul %119, %120, %cst_46 {dimension_numbers = #tpu.dot_dimension_numbers<[1], [1], [0], [0], [0, 0, 1, 0], [], []>} : vector<8x8xbf16>, vector<8x8xbf16>, vector<8x8xf32> -> vector<8x8xf32>
    %cst_47 = arith.constant 0.353553385 : f32
    %122 = vector.broadcast %cst_47 : f32 to vector<8x8xf32>
    %123 = arith.mulf %121, %122 : vector<8x8xf32>
    %124 = arith.addf %123, %78 : vector<8x8xf32>
    %cst_48 = arith.constant dense<0xFF800000> : vector<8xf32>
    %125 = vector.multi_reduction <maximumf>, %124, %cst_48 [1] : vector<8x8xf32> to vector<8xf32>
    %126 = vector.shape_cast %125 : vector<8xf32> to vector<8x1xf32>
    %127 = vector.broadcast %126 : vector<8x1xf32> to vector<8x8xf32>
    %128 = arith.subf %124, %127 : vector<8x8xf32>
    %129 = math.exp %128 : vector<8x8xf32>
    %cst_49 = arith.constant dense<0.000000e+00> : vector<8xf32>
    %130 = vector.multi_reduction <add>, %129, %cst_49 [1] : vector<8x8xf32> to vector<8xf32>
    %131 = vector.shape_cast %130 : vector<8xf32> to vector<8x1xf32>
    %132 = tpu.reciprocal %131 {approx = true} : vector<8x1xf32> -> vector<8x1xf32>
    %133 = vector.broadcast %132 : vector<8x1xf32> to vector<8x8xf32>
    %134 = arith.mulf %129, %133 : vector<8x8xf32>
    %135 = arith.truncf %134 : vector<8x8xf32> to vector<8x8xbf16>
    %136 = vector.extract_strided_slice %69 {offsets = [0, 16], sizes = [8, 8], strides = [1, 1]} : vector<8x32xbf16> to vector<8x8xbf16>
    %cst_50 = arith.constant dense<0.000000e+00> : vector<8x8xf32>
    %137 = tpu.matmul %135, %136, %cst_50 {dimension_numbers = #tpu.dot_dimension_numbers<[1], [0], [0], [1], [0, 0, 1, 1], [], []>} : vector<8x8xbf16>, vector<8x8xbf16>, vector<8x8xf32> -> vector<8x8xf32>
    %c0_51 = arith.constant 0 : index
    %c16 = arith.constant 16 : index
    %138 = vector.load %arg17[%c0_51, %c16] : memref<8x32xf32, #tpu.memory_space<vmem>>, vector<8x8xf32>
    tpu.vector_store %arg17[%c0_51, %c16], %137 {strides = array<i32>} : memref<8x32xf32, #tpu.memory_space<vmem>>, vector<8x8xf32>,
    %139 = vector.extract_strided_slice %67 {offsets = [0, 24], sizes = [8, 8], strides = [1, 1]} : vector<8x32xbf16> to vector<8x8xbf16>
    %140 = vector.extract_strided_slice %68 {offsets = [0, 24], sizes = [8, 8], strides = [1, 1]} : vector<8x32xbf16> to vector<8x8xbf16>
    %cst_52 = arith.constant dense<0.000000e+00> : vector<8x8xf32>
    %141 = tpu.matmul %139, %140, %cst_52 {dimension_numbers = #tpu.dot_dimension_numbers<[1], [1], [0], [0], [0, 0, 1, 0], [], []>} : vector<8x8xbf16>, vector<8x8xbf16>, vector<8x8xf32> -> vector<8x8xf32>
    %cst_53 = arith.constant 0.353553385 : f32
    %142 = vector.broadcast %cst_53 : f32 to vector<8x8xf32>
    %143 = arith.mulf %141, %142 : vector<8x8xf32>
    %144 = arith.addf %143, %78 : vector<8x8xf32>
    %cst_54 = arith.constant dense<0xFF800000> : vector<8xf32>
    %145 = vector.multi_reduction <maximumf>, %144, %cst_54 [1] : vector<8x8xf32> to vector<8xf32>
    %146 = vector.shape_cast %145 : vector<8xf32> to vector<8x1xf32>
    %147 = vector.broadcast %146 : vector<8x1xf32> to vector<8x8xf32>
    %148 = arith.subf %144, %147 : vector<8x8xf32>
    %149 = math.exp %148 : vector<8x8xf32>
    %cst_55 = arith.constant dense<0.000000e+00> : vector<8xf32>
    %150 = vector.multi_reduction <add>, %149, %cst_55 [1] : vector<8x8xf32> to vector<8xf32>
    %151 = vector.shape_cast %150 : vector<8xf32> to vector<8x1xf32>
    %152 = tpu.reciprocal %151 {approx = true} : vector<8x1xf32> -> vector<8x1xf32>
    %153 = vector.broadcast %152 : vector<8x1xf32> to vector<8x8xf32>
    %154 = arith.mulf %149, %153 : vector<8x8xf32>
    %155 = arith.truncf %154 : vector<8x8xf32> to vector<8x8xbf16>
    %156 = vector.extract_strided_slice %69 {offsets = [0, 24], sizes = [8, 8], strides = [1, 1]} : vector<8x32xbf16> to vector<8x8xbf16>
    %cst_56 = arith.constant dense<0.000000e+00> : vector<8x8xf32>
    %157 = tpu.matmul %155, %156, %cst_56 {dimension_numbers = #tpu.dot_dimension_numbers<[1], [0], [0], [1], [0, 0, 1, 1], [], []>} : vector<8x8xbf16>, vector<8x8xbf16>, vector<8x8xf32> -> vector<8x8xf32>
    %c0_57 = arith.constant 0 : index
    %c24 = arith.constant 24 : index
    %158 = vector.load %arg17[%c0_57, %c24] : memref<8x32xf32, #tpu.memory_space<vmem>>, vector<8x8xf32>
    tpu.vector_store %arg17[%c0_57, %c24], %157 {strides = array<i32>} : memref<8x32xf32, #tpu.memory_space<vmem>>, vector<8x8xf32>,
    %c0_58 = arith.constant 0 : index
    %c0_59 = arith.constant 0 : index
    %159 = vector.load %arg17[%c0_58, %c0_59] : memref<8x32xf32, #tpu.memory_space<vmem>>, vector<8x32xf32>
    %160 = arith.truncf %159 : vector<8x32xf32> to vector<8x32xbf16>
    %c0_60 = arith.constant 0 : index
    %c0_61 = arith.constant 0 : index
    %161 = vector.load %arg8[%c0_60, %c0_61] : memref<32x32xbf16, #tpu.memory_space<vmem>>, vector<32x32xbf16>
    %cst_62 = arith.constant dense<0.000000e+00> : vector<8x32xf32>
    %162 = tpu.matmul %160, %161, %cst_62 {dimension_numbers = #tpu.dot_dimension_numbers<[1], [0], [0], [1], [0, 0, 1, 1], [], []>} : vector<8x32xbf16>, vector<32x32xbf16>, vector<8x32xf32> -> vector<8x32xf32>
    %c0_63 = arith.constant 0 : index
    %c0_64 = arith.constant 0 : index
    %163 = vector.load %arg9[%c0_63, %c0_64] : memref<1x32xf32, #tpu.memory_space<vmem>>, vector<1x32xf32>
    %164 = vector.broadcast %163 : vector<1x32xf32> to vector<8x32xf32>
    %165 = arith.addf %162, %164 : vector<8x32xf32>
    %166 = arith.addf %1, %165 : vector<8x32xf32>
    %c0_65 = arith.constant 0 : index
    %c0_66 = arith.constant 0 : index
    %167 = vector.load %arg10[%c0_65, %c0_66] : memref<1x32xf32, #tpu.memory_space<vmem>>, vector<1x32xf32>
    %c0_67 = arith.constant 0 : index
    %c0_68 = arith.constant 0 : index
    %168 = vector.load %arg11[%c0_67, %c0_68] : memref<1x32xf32, #tpu.memory_space<vmem>>, vector<1x32xf32>
    %cst_69 = arith.constant dense<0.000000e+00> : vector<8xf32>
    %169 = vector.multi_reduction <add>, %166, %cst_69 [1] : vector<8x32xf32> to vector<8xf32>
    %170 = vector.shape_cast %169 : vector<8xf32> to vector<8x1xf32>
    %cst_70 = arith.constant 3.200000e+01 : f32
    %171 = vector.broadcast %cst_70 : f32 to vector<8x1xf32>
    %172 = arith.divf %170, %171 : vector<8x1xf32>
    %173 = vector.broadcast %172 : vector<8x1xf32> to vector<8x32xf32>
    %174 = arith.subf %166, %173 : vector<8x32xf32>
    %175 = arith.mulf %174, %174 : vector<8x32xf32>
    %cst_71 = arith.constant dense<0.000000e+00> : vector<8xf32>
    %176 = vector.multi_reduction <add>, %175, %cst_71 [1] : vector<8x32xf32> to vector<8xf32>
    %177 = vector.shape_cast %176 : vector<8xf32> to vector<8x1xf32>
    %cst_72 = arith.constant 3.200000e+01 : f32
    %178 = vector.broadcast %cst_72 : f32 to vector<8x1xf32>
    %179 = arith.divf %177, %178 : vector<8x1xf32>
    %180 = vector.broadcast %172 : vector<8x1xf32> to vector<8x32xf32>
    %181 = arith.subf %166, %180 : vector<8x32xf32>
    %cst_73 = arith.constant 9.99999974E-6 : f32
    %182 = vector.broadcast %cst_73 : f32 to vector<8x1xf32>
    %183 = arith.addf %179, %182 : vector<8x1xf32>
    %184 = math.rsqrt %183 : vector<8x1xf32>
    %185 = vector.broadcast %184 : vector<8x1xf32> to vector<8x32xf32>
    %186 = arith.mulf %181, %185 : vector<8x32xf32>
    %187 = vector.broadcast %167 : vector<1x32xf32> to vector<8x32xf32>
    %188 = arith.mulf %186, %187 : vector<8x32xf32>
    %189 = vector.broadcast %168 : vector<1x32xf32> to vector<8x32xf32>
    %190 = arith.addf %188, %189 : vector<8x32xf32>
    %191 = arith.truncf %190 : vector<8x32xf32> to vector<8x32xbf16>
    %cst_74 = arith.constant 0.000000e+00 : f32
    %192 = vector.broadcast %cst_74 : f32 to vector<8x32xf32>
    %c0_75 = arith.constant 0 : index
    %c0_76 = arith.constant 0 : index
    %193 = vector.load %arg12[%c0_75, %c0_76] : memref<32x128xbf16, #tpu.memory_space<vmem>>, vector<32x128xbf16>
    %cst_77 = arith.constant dense<0.000000e+00> : vector<8x128xf32>
    %194 = tpu.matmul %191, %193, %cst_77 {dimension_numbers = #tpu.dot_dimension_numbers<[1], [0], [0], [1], [0, 0, 1, 1], [], []>} : vector<8x32xbf16>, vector<32x128xbf16>, vector<8x128xf32> -> vector<8x128xf32>
    %c0_78 = arith.constant 0 : index
    %c0_79 = arith.constant 0 : index
    %195 = vector.load %arg13[%c0_78, %c0_79] : memref<1x128xf32, #tpu.memory_space<vmem>>, vector<1x128xf32>
    %196 = vector.broadcast %195 : vector<1x128xf32> to vector<8x128xf32>
    %197 = arith.addf %194, %196 : vector<8x128xf32>
    %cst_80 = arith.constant 5.000000e-01 : f32
    %198 = vector.broadcast %cst_80 : f32 to vector<8x128xf32>
    %199 = arith.mulf %198, %197 : vector<8x128xf32>
    %cst_81 = arith.constant 4.471500e-02 : f32
    %200 = vector.broadcast %cst_81 : f32 to vector<8x128xf32>
    %201 = arith.mulf %200, %197 : vector<8x128xf32>
    %202 = arith.mulf %201, %197 : vector<8x128xf32>
    %203 = arith.mulf %202, %197 : vector<8x128xf32>
    %204 = arith.addf %197, %203 : vector<8x128xf32>
    %cst_82 = arith.constant 0.797884583 : f32
    %205 = vector.broadcast %cst_82 : f32 to vector<8x128xf32>
    %206 = arith.mulf %205, %204 : vector<8x128xf32>
    %207 = math.tanh %206 : vector<8x128xf32>
    %cst_83 = arith.constant 1.000000e+00 : f32
    %208 = vector.broadcast %cst_83 : f32 to vector<8x128xf32>
    %209 = arith.addf %208, %207 : vector<8x128xf32>
    %210 = arith.mulf %199, %209 : vector<8x128xf32>
    %211 = arith.truncf %210 : vector<8x128xf32> to vector<8x128xbf16>
    %c0_84 = arith.constant 0 : index
    %c0_85 = arith.constant 0 : index
    %212 = vector.load %arg14[%c0_84, %c0_85] : memref<128x32xbf16, #tpu.memory_space<vmem>>, vector<128x32xbf16>
    %cst_86 = arith.constant dense<0.000000e+00> : vector<8x32xf32>
    %213 = tpu.matmul %211, %212, %cst_86 {dimension_numbers = #tpu.dot_dimension_numbers<[1], [0], [0], [1], [0, 0, 1, 1], [], []>} : vector<8x128xbf16>, vector<128x32xbf16>, vector<8x32xf32> -> vector<8x32xf32>
    %214 = arith.addf %192, %213 : vector<8x32xf32>
    %215 = arith.addf %166, %214 : vector<8x32xf32>
    %c0_87 = arith.constant 0 : index
    %c0_88 = arith.constant 0 : index
    %216 = vector.load %arg15[%c0_87, %c0_88] : memref<1x32xf32, #tpu.memory_space<vmem>>, vector<1x32xf32>
    %217 = vector.broadcast %216 : vector<1x32xf32> to vector<8x32xf32>
    %218 = arith.addf %215, %217 : vector<8x32xf32>
    %c0_89 = arith.constant 0 : index
    %c0_90 = arith.constant 0 : index
    %c0_91 = arith.constant 0 : index
    %219 = vector.load %arg16[%c0_89, %c0_90, %c0_91] : memref<1x8x32xf32, #tpu.memory_space<vmem>>, vector<1x8x32xf32>
    %220 = vector.shape_cast %219 : vector<1x8x32xf32> to vector<8x32xf32>
    %221 = vector.shape_cast %218 : vector<8x32xf32> to vector<1x8x32xf32>
    tpu.vector_store %arg16[%c0_89, %c0_90, %c0_91], %221 {strides = array<i32>} : memref<1x8x32xf32, #tpu.memory_space<vmem>>, vector<1x8x32xf32>,
    return
  }
  func.func @transform_0(%arg0: i32, %arg1: i32) -> (i32, i32, i32) {
    %c0_i32 = arith.constant 0 : i32
    %c0_i32_0 = arith.constant 0 : i32
    return %arg0, %arg1, %c0_i32 : i32, i32, i32
  }
  func.func @transform_1(%arg0: i32, %arg1: i32) -> (i32, i32, i32) {
    %c0_i32 = arith.constant 0 : i32
    %c0_i32_0 = arith.constant 0 : i32
    %c0_i32_1 = arith.constant 0 : i32
    return %arg0, %c0_i32, %c0_i32_0 : i32, i32, i32
  }
  func.func @transform_2(%arg0: i32, %arg1: i32) -> (i32, i32) {
    %c0_i32 = arith.constant 0 : i32
    %c0_i32_0 = arith.constant 0 : i32
    %c0_i32_1 = arith.constant 0 : i32
    return %c0_i32, %c0_i32_0 : i32, i32
  }
  func.func @transform_3(%arg0: i32, %arg1: i32) -> (i32, i32) {
    %c0_i32 = arith.constant 0 : i32
    %c0_i32_0 = arith.constant 0 : i32
    %c0_i32_1 = arith.constant 0 : i32
    return %c0_i32, %c0_i32_0 : i32, i32
  }
  func.func @transform_4(%arg0: i32, %arg1: i32) -> (i32, i32) {
    %c0_i32 = arith.constant 0 : i32
    %c0_i32_0 = arith.constant 0 : i32
    %c0_i32_1 = arith.constant 0 : i32
    return %c0_i32, %c0_i32_0 : i32, i32
  }
  func.func @transform_5(%arg0: i32, %arg1: i32) -> (i32, i32) {
    %c0_i32 = arith.constant 0 : i32
    %c0_i32_0 = arith.constant 0 : i32
    %c0_i32_1 = arith.constant 0 : i32
    return %c0_i32, %c0_i32_0 : i32, i32
  }
  func.func @transform_6(%arg0: i32, %arg1: i32) -> (i32, i32) {
    %c0_i32 = arith.constant 0 : i32
    %c0_i32_0 = arith.constant 0 : i32
    %c0_i32_1 = arith.constant 0 : i32
    return %c0_i32, %c0_i32_0 : i32, i32
  }
  func.func @transform_7(%arg0: i32, %arg1: i32) -> (i32, i32) {
    %c0_i32 = arith.constant 0 : i32
    %c0_i32_0 = arith.constant 0 : i32
    %c0_i32_1 = arith.constant 0 : i32
    return %c0_i32, %c0_i32_0 : i32, i32
  }
  func.func @transform_8(%arg0: i32, %arg1: i32) -> (i32, i32) {
    %c0_i32 = arith.constant 0 : i32
    %c0_i32_0 = arith.constant 0 : i32
    %c0_i32_1 = arith.constant 0 : i32
    return %c0_i32, %c0_i32_0 : i32, i32
  }
  func.func @transform_9(%arg0: i32, %arg1: i32) -> (i32, i32) {
    %c0_i32 = arith.constant 0 : i32
    %c0_i32_0 = arith.constant 0 : i32
    %c0_i32_1 = arith.constant 0 : i32
    return %c0_i32, %c0_i32_0 : i32, i32
  }
  func.func @transform_10(%arg0: i32, %arg1: i32) -> (i32, i32) {
    %c0_i32 = arith.constant 0 : i32
    %c0_i32_0 = arith.constant 0 : i32
    %c0_i32_1 = arith.constant 0 : i32
    return %c0_i32, %c0_i32_0 : i32, i32
  }
  func.func @transform_11(%arg0: i32, %arg1: i32) -> (i32, i32) {
    %c0_i32 = arith.constant 0 : i32
    %c0_i32_0 = arith.constant 0 : i32
    %c0_i32_1 = arith.constant 0 : i32
    return %c0_i32, %c0_i32_0 : i32, i32
  }
  func.func @transform_12(%arg0: i32, %arg1: i32) -> (i32, i32) {
    %c0_i32 = arith.constant 0 : i32
    %c0_i32_0 = arith.constant 0 : i32
    %c0_i32_1 = arith.constant 0 : i32
    return %c0_i32, %c0_i32_0 : i32, i32
  }
  func.func @transform_13(%arg0: i32, %arg1: i32) -> (i32, i32) {
    %c0_i32 = arith.constant 0 : i32
    %c0_i32_0 = arith.constant 0 : i32
    %c0_i32_1 = arith.constant 0 : i32
    return %c0_i32, %c0_i32_0 : i32, i32
  }
  func.func @transform_14(%arg0: i32, %arg1: i32) -> (i32, i32, i32) {
    %c0_i32 = arith.constant 0 : i32
    %c0_i32_0 = arith.constant 0 : i32
    return %arg0, %arg1, %c0_i32 : i32, i32, i32
  }
}

</mosaic_0001>

<bundles_post_ra>
// kernel: tpu_custom_call.1
= control target key start
LH: loop header
LB: loop body
LE: loop exit
PB: predicated region body
PF: predicated region fallthrough
CT: control target
= control target key end

     0   :  { %19 = vsyncpa [#allocation4], 0  ;;  %s2533_s0 = inlined_call_operand.vmem [shape: f32[2,8,32], index: 0, kind: input, shape index: {}]   ;;  %s2534_s1 = inlined_call_operand.vmem [shape: f32[2,8,32], index: 1, kind: input, shape index: {}]   ;;  %s2535_s2 = inlined_call_operand.vmem [shape: f32[1,32], index: 2, kind: input, shape index: {}]   ;;  %s2536_s3 = inlined_call_operand.vmem [shape: f32[1,32], index: 3, kind: input, shape index: {}]   ;;  %s2537_s4 = inlined_call_operand.vmem [shape: bf16[32,96], index: 4, kind: input, shape index: {}]   ;;  %s2538_s5 = inlined_call_operand.vmem [shape: f32[1,96], index: 5, kind: input, shape index: {}]   ;;  %s2539_s6 = inlined_call_operand.vmem [shape: bf16[32,32], index: 6, kind: input, shape index: {}]   ;;  %s2540_s7 = inlined_call_operand.vmem [shape: f32[1,32], index: 7, kind: input, shape index: {}]   ;;  %s2541_s8 = inlined_call_operand.vmem [shape: f32[1,32], index: 8, kind: input, shape index: {}]   ;;  %s2542_s9 = inlined_call_operand.hbm [shape: f32[1,32], index: 9, kind: input, shape index: {}]   ;;  %s2543_s10 = inlined_call_operand.vmem [shape: bf16[32,128], index: 10, kind: input, shape index: {}]   ;;  %s2544_s11 = inlined_call_operand.hbm [shape: f32[1,128], index: 11, kind: input, shape index: {}]   ;;  %s2545_s12 = inlined_call_operand.vmem [shape: bf16[128,32], index: 12, kind: input, shape index: {}]   ;;  %s2546_s13 = inlined_call_operand.vmem [shape: f32[1,32], index: 13, kind: input, shape index: {}]   ;;  %s2547_s14 = inlined_call_operand.hbm [shape: f32[2,8,32], index: 14, kind: output, shape index: {}]  }
   0x1   :  { %20 = vsyncpa [#allocation7], 0 }
   0x2   :  { %21 = vsyncpa [#allocation5], 0 }
   0x3   :  { %23 = vsyncpa [#allocation5 + $0x1], 0  ;;  %s2187_s29 = smov 0   ;;  %s2189_s30 = smov 0  }
   0x4   :  { %s2191_s15 = smov 0   ;;  %s2193_s16 = smov 0  }
   0x5   :  { %s2195_s17 = smov 0   ;;  %s2197_s18 = smov 0  }
   0x6 LB: > { %2555 = sst [smem:[#allocation12_spill]] %s2084_s15  ;;  %s1636_s19 = sadd.s32 4294967295, %s2096_s18   ;;  %s2096_s18 = sphi %s2197_s18, %s29_s18   ;;  %s2092_s17 = sphi %s2195_s17, %s2572_s17   ;;  %s2088_s16 = sphi %s2193_s16, %s2571_s16   ;;  %s2084_s15 = sphi %s2191_s15, %s2570_s15   ;;  %s2080_s30 = sphi %s2189_s30, %s2574_s30   ;;  %s2076_s29 = sphi %s2187_s29, %s2573_s29  }
   0x7   : > { %2556 = sst [smem:[#allocation13_spill]] %s2092_s17  ;;  %s1637_s20 = sadd.s32 4294967294, %s2096_s18  }
   0x8   : > { %s41_s21 = sadd.s32 1, %s2092_s17  ;;  %s356_s22 = sadd.s32 1, %s2084_s15 }
   0x9   : > { %p43_p0 = scmp.ge.s32.totalorder %s41_s21, 2  ;;  %p366_p1 = scmp.ne.s32.totalorder %s2084_s15, %s2080_s30 }
   0xa   : > { %p367_p2 = scmp.eq.s32.totalorder %s1636_s19, 1  ;;  %p372_p3 = scmp.ne.s32.totalorder %s2080_s30, %s2076_s29 }
   0xb   : > { %s2576_s21 = smov (%p43_p0, %s41_s21), 0  ;;  %p373_p5 = scmp.eq.s32.totalorder %s1637_s20, 1 }
   0xc   : > { %2557 = sst [smem:[#allocation14_spill]] %s2576_s21  ;;  %p2227_p4 = por %p367_p2, %p366_p1 }
   0xd   : > { %s351_s24 = ssub.s32 %s2092_s17, %s2576_s21  ;;  %p1638_p6 = scmp.ge.s32.totalorder %s2096_s18, 1 }
   0xe   : > { %s2558_s23 = scalar_select %p2227_p4, 1, 0 }
   0xf   : > { %p354_p7 = scmp.eq.s32.totalorder %s351_s24, 0  ;;  %p2234_p8 = por %p373_p5, %p372_p3 }
  0x10   : > { %p380_p9 = scmp.lt.s32.totalorder %s2096_s18, 3  ;;  %p2246_p11 = scmp.eq.s32.totalorder %s1636_s19, 0 }
  0x11   : > { %s2559_s25 = scalar_select %p2234_p8, 1, 0 }
  0x12   : > { %s2240_s26 = scalar_select %p354_p7, %s2084_s15, %s356_s22  }
  0x13   : > { %2560 = sst [smem:[#allocation15_spill]] %s2559_s25  ;;  %p2242_p10 = pnand %p1638_p6, %p380_p9 }
  0x14   : > { %2561 = sst [smem:[#allocation16_spill]] %s2240_s26  ;;  %s2098_s20 = smov [#allocation3]  }
  0x15   : > { %s2563_s28 = scalar_select %p2246_p11, 1, 0 }
  0x16   : > { %p1845_p12 = pneg %p2242_p10  ;;  %s414_s24 = sshll.u32 %s2098_s20, 4  ;;  %s415_s24 = int_to_ptr.vmem [resolvable:$true] %s414_s24 }
  0x17   : > { %s2099_s21 = smov [#allocation6]   ;;  %s1971_s19 = scalar_lea.vmem %s415_s24, 16 }
  0x18   : > { %s428_s17 = sshll.u32 %s2099_s21, 4  ;;  %p2254_p13 = pnand %p2246_p11, %p1845_p12  ;;  %s429_s17 = int_to_ptr.vmem [resolvable:$true] %s428_s17 }
  0x19   : > { %p1972_p1 = scmp.ne.s32.totalorder %s415_s24, %s1971_s19  ;;  %s1978_s20 = scalar_lea.vmem %s415_s24, 32 }
  0x1a   : > { %p1962_p0 = pneg %p2254_p13  ;;  %p1979_p5 = scmp.lt.s32.totalorder %s415_s24, %s415_s24 }
  0x1b   : > { %p1980_p6 = scmp.lt.s32.totalorder %s1978_s20, %s1971_s19 }
  0x1c   : > { %p1974_p2 = pnand %p1972_p1, %p1962_p0 }
  0x1d   : > { %p1981_p7 = por %p1980_p6, %p1979_p5 }
  0x1e   : > { %p1975_p3 = pneg %p1974_p2 }
  0x20   : > { %p1982_p9 = pnand %p1981_p7, %p1975_p3 }
  0x22   : > { %1985 = shalt.err (!%p1982_p9)
}
  0x23   : > { %1848 = dma.hbm_to_vmem [thread:$0]  (!%p2254_p13), %s2542_s9, 16, %s415_s24, [#allocation4]  }
  0x24   : > { %s1997_s15 = scalar_lea.vmem %s429_s17, 16  ;;  %s2004_s25 = scalar_lea.vmem %s429_s17, 32 }
  0x25   : > { %p1998_p12 = scmp.ne.s32.totalorder %s429_s17, %s1997_s15  ;;  %p2005_p2 = scmp.lt.s32.totalorder %s429_s17, %s429_s17 }
  0x26   : > { %p2006_p4 = scmp.lt.s32.totalorder %s2004_s25, %s1997_s15 }
  0x27   : > { %p2000_p8 = pnand %p1998_p12, %p1962_p0 }
  0x28   : > { %p2007_p11 = por %p2006_p4, %p2005_p2 }
  0x29   : > { %p2001_p1 = pneg %p2000_p8 }
  0x2b   : > { %p2008_p5 = pnand %p2007_p11, %p2001_p1 }
  0x2d   : > { %2011 = shalt.err (!%p2008_p5)
}
  0x2e   : > { %1851 = dma.hbm_to_vmem [thread:$0]  (!%p2254_p13), %s2544_s11, 16, %s429_s17, [#allocation7]  }
  0x2f   : > { %464 = sbr.rel (%p2242_p10) target bundleno = 2488 (0x9b8), region = 76  ;;  %p2565_p3 = scmp.ne.s32.totalorder (!%p2242_p10), %s2563_s28, 0 }
  0x34   : > { %2063 = dma.done.wait (%p2565_p3), [#allocation4], 16  }
  0x35   : > { %2065 = vsyncadd (%p2565_p3), [#allocation4], 4294967280 }
  0x36   : > { %2067 = dma.done.wait (%p2565_p3), [#allocation7], 16  }
  0x37   : > { %2069 = vsyncadd (%p2565_p3), [#allocation7], 4294967280  ;;  %p520_p4 = scmp.lt.s32.totalorder %s2088_s16, 1  ;;  %vm536_vm0 = vcmask 261120   ;;  %v2302_v4 = vld [vmem:[%s2537_s4 + $0x8] sm:$0xff]   ;;  %s2100_s20 = smov 96   ;;  %v753_v63 = vlaneseq }
  0x38   : > { %v2311_v15 = vld [vmem:[%s2537_s4] sm:$0xff]   ;;  %v2101_v16 = vmov 0.0   ;;  %vm2102_vm1 = vmmov 0   ;;  %s2103_s28 = smov 120   ;;  %s2104_s19 = smov 112   ;;  %vm761_vm2 = vcmask 64512  }
  0x39   : > { %s521_s15 = scalar_select %p520_p4, %s2088_s16, 1  ;;  %1727 = vmatprep.subr.bf16.mxu0 %v2101_v16  ;;  %1731 = vmatprep.mubr.msk.bf16.mxu0 %vm2102_vm1, %v2101_v16  ;;  %v2327_v17 = vld [vmem:[%s2538_s5] ss:$0 sm:$0xff]  ;;  %vm825_vm4 = vcmask 1043456   ;;  %vm989_vm5 = vcmask 130112   ;;  %vm1107_vm6 = vcmask 195712  }
  0x3a   : > { %1728 = vmatpush3.bf16.msra.mxu0 %v2302_v4  ;;  %1751 = vmatprep.subr.bf16.mxu1 %v2101_v16  ;;  %v1648_v25 = vld [vmem:[%s2535_s2] ss:$0 sm:$0xff]  ;;  %s2109_s22 = smov 16   ;;  %vm1225_vm7 = vcmask 261312   ;;  %s1684_s26 = sshll.u32 %s2088_s16, 7 }
  0x3b   : > { %s1646_s17 = sshll.u32 %s521_s15, 3  ;;  %1729 = vmatprep.subr.bf16.mxu0 %v2101_v16  ;;  %1753 = vmatprep.mubr.msk.bf16.mxu1 %vm2102_vm1, %v2101_v16  ;;  %v1649_v27 = vld [vmem:[%s2536_s3] ss:$0 sm:$0xff]  ;;  %s2106_s15 = smov 64  }
  0x3c   : > { %s526_s27 = scalar_lea.vmem %s2533_s0, %s1646_s17  ;;  %s530_s21 = scalar_lea.vmem %s2534_s1, %s1646_s17 }
  0x3d   : > { %v2294_v0 = vld [vmem:[%s526_s27] sm:$0xff]  ;;  %s2108_s17 = smov 8   ;;  %p2566_p10 = scmp.ne.s32.totalorder %s2558_s23, 0 }
  0x3e   : > { %v533_v1 = vld [vmem:[%s530_s21] sm:$0xff]  ;;  %v537_v2 = vsel %vm536_vm0, %v2294_v0, 0.0  ;;  %1730 = vmatpush3.bf16.msra.mxu0 %v2311_v15  ;;  %s2110_s21 = smov 24  }
  0x3f   : > { %v566_v3 = vsel %vm536_vm0, %v533_v1, 0.0  ;;  %538 = vadd.xlane.f32.xlu0 %v537_v2  ;;  %1735 = vmatprep.subr.bf16.mxu0 %v2101_v16  ;;  %v758_v2 = vand.u32 127, %v753_v63 }
  0x43   : > { %567 = vadd.xlane.f32.xlu0 %v566_v3 }
  0x59   : > { %650 = vrot.lane.b32.xlu0 %v2302_v4, %s2100_s20 }
  0xc8   : > { %v539_v5 = vpop.xlane.xlu0 %538 }
  0xc9   : > { %v541_v6 = vmul.f32 0.03125, %v539_v5 }
  0xcb   : > { %v542_v7 = vsub.f32 %v2294_v0, %v541_v6 }
  0xcc   : > { %v568_v8 = vpop.xlane.xlu0 %567 }
  0xcd   : > { %v569_v9 = vmul.f32 0.03125, %v568_v8  ;;  %v543_v10 = vmul.f32 %v542_v7, %v542_v7 }
  0xcf   : > { %v570_v11 = vsub.f32 %v533_v1, %v569_v9  ;;  %v544_v12 = vsel %vm536_vm0, %v543_v10, 0.0  ;;  %v754_v1 = vshrl.u32 %v753_v63, 7 }
  0xd0   : > { %545 = vadd.xlane.f32.xlu1 %v544_v12  ;;  %v651_v34 = vpop.permute.xlu0 %650 }
  0xd1   : > { %v571_v13 = vmul.f32 %v570_v11, %v570_v11  ;;  %vm759_vm3 = vcmp.le.s32.totalorder %v758_v2, %v754_v1 }
  0xd3   : > { %v572_v14 = vsel %vm536_vm0, %v571_v13, 0.0 }
  0xd4   : > { %573 = vadd.xlane.f32.xlu1 %v572_v14 }
  0xe5   : > { %648 = vrot.lane.b32.xlu1 %v2311_v15, %s2100_s20 }
  0xe9   : > { %654 = vrot.lane.b32.xlu1 %v2327_v17, %s2100_s20  ;;  %s2105_s20 = smov 104  }
 0x159   : > { %v546_v18 = vpop.xlane.xlu1 %545 }
 0x15a   : > { %v547_v19 = vmul.f32 0.03125, %v546_v18 }
 0x15c   : > { %v548_v20 = vadd.f32 1e-05, %v547_v19 }
 0x15d   : > { %v574_v21 = vpop.xlane.xlu1 %573 }
 0x15e   : > { %1936 = vrsqrt.f32 %v548_v20  ;;  %v575_v22 = vmul.f32 0.03125, %v574_v21 }
 0x160   : > { %v576_v23 = vadd.f32 1e-05, %v575_v22 }
 0x161   : > { %v649_v36 = vpop.permute.xlu1 %648 }
 0x162   : > { %1938 = vrsqrt.f32 %v576_v23 }
 0x165   : > { %v655_v44 = vpop.permute.xlu1 %654 }
 0x16b   : > { %v1937_v24 = vpop.eup %1936 }
 0x16c   : > { %v550_v26 = vmul.f32 %v1937_v24, %v542_v7 }
 0x16e   : > { %v557_v28 = vmul.f32 %v1648_v25, %v550_v26 }
 0x16f   : > { %v1939_v29 = vpop.eup %1938 }
 0x170   : > { %v564_v30 = vadd.f32 %v1649_v27, %v557_v28  ;;  %v578_v31 = vmul.f32 %v1939_v29, %v570_v11 }
 0x172   : > { %v565_v32 = vpack.c.bf16 %v564_v30, %v564_v30  ;;  %v579_v33 = vmul.f32 %v1648_v25, %v578_v31 }
 0x174   : > { %1732 = vmatmul.mubr.msk.bf16.vlgmr.msra.gmra.mxu0 %vm536_vm0, %v565_v32  ;;  %v580_v35 = vadd.f32 %v1649_v27, %v579_v33 }
 0x175   : > { %1736 = vmatpush3.bf16.msra.mxu0 %v651_v34  ;;  %1739 = vmatprep.mubr.msk.bf16.mxu0 %vm2102_vm1, %v2101_v16 }
 0x176   : > { %1737 = vmatprep.subr.bf16.mxu0 %v2101_v16  ;;  %v581_v37 = vpack.c.bf16 %v580_v35, %v580_v35 }
 0x179   : > { %1738 = vmatpush3.bf16.msra.mxu0 %v649_v36 }
 0x17a   : > { %1743 = vmatprep.subr.bf16.mxu0 %v2101_v16 }
 0x17c   : > { %1740 = vmatmul.mubr.msk.bf16.vlgmr.msra.gmra.mxu0 %vm536_vm0, %v581_v37 }
 0x17d   : > { %1747 = vmatprep.mubr.msk.bf16.mxu0 %vm2102_vm1, %v2101_v16 }
 0x234   : > { %v642_v38 = vpop.f32.mrf.mxu0 }
 0x235   : > { %v643_v39 = vadd.f32 %v2327_v17, %v642_v38 }
 0x236   : > { %v1733_v40 = vpop.f32.mrf.mxu0 }
 0x237   : > { %v749_v41 = vpack.c.bf16 %v643_v39, %v643_v39 }
 0x238   : > { %v645_v42 = vpop.f32.mrf.mxu0 }
 0x239   : > { %871 = vrot.lane.b32.xlu0 %v749_v41, %s2103_s28 }
 0x23a   : > { %v1734_v43 = vpop.f32.mrf.mxu0 }
 0x23c   : > { %v694_v45 = vpop.f32.mrf.mxu0 }
 0x23d   : > { %v695_v46 = vadd.f32 %v694_v45, %v655_v44  ;;  %991 = vrot.lane.b32.xlu0 %v749_v41, %s2104_s19 }
 0x23e   : > { %v1741_v47 = vpop.f32.mrf.mxu0 }
 0x23f   : > { %v750_v48 = vpack.c.bf16 %v695_v46, %v695_v46 }
 0x240   : > { %v697_v49 = vpop.f32.mrf.mxu0 }
 0x241   : > { %1109 = vrot.lane.b32.xlu0 %v749_v41, %s2105_s20  ;;  %874 = vrot.lane.b32.xlu1 %v750_v48, %s2103_s28  ;;  %v766_v50 = vsel %vm761_vm2, %v750_v48, 0 }
 0x242   : > { %v1742_v51 = vpop.f32.mrf.mxu0  ;;  %1752 = vmatpush3.bf16.xpose.msra.mxu1 %v766_v50 }
 0x243   : > { %1763 = vmatprep.subr.bf16.mxu1 %v2101_v16 }
 0x245   : > { %993 = vrot.lane.b32.xlu1 %v750_v48, %s2104_s19  ;;  %700 = vrot.lane.b32.xlu0 %v2311_v15, %s2106_s15 }
 0x249   : > { %1111 = vrot.lane.b32.xlu1 %v750_v48, %s2105_s20  ;;  %1754 = vmatmul.mubr.msk.bf16.vlgmr.msra.gmra.mxu1 %vm761_vm2, %v749_v41 }
 0x24a   : > { %1765 = vmatprep.mubr.msk.bf16.mxu1 %vm2102_vm1, %v2101_v16 }
 0x24d   : > { %702 = vrot.lane.b32.xlu1 %v2302_v4, %s2106_s15  ;;  %v2107_v4 = vmov -1e+30  }
 0x24e   : > { %v760_v5 = vsel %vm759_vm3, 0.0, %v2107_v4 }
 0x2ab   : > { %v872_v52 = vpop.permute.xlu0 %871 }
 0x2af   : > { %v992_v55 = vpop.permute.xlu0 %991 }
 0x2b3   : > { %v875_v53 = vpop.permute.xlu1 %874  ;;  %v1110_v59 = vpop.permute.xlu0 %1109 }
 0x2b4   : > { %v880_v54 = vsel %vm761_vm2, %v875_v53, 0 }
 0x2b5   : > { %1764 = vmatpush3.bf16.xpose.msra.mxu1 %v880_v54 }
 0x2b6   : > { %1775 = vmatprep.subr.bf16.mxu1 %v2101_v16 }
 0x2b7   : > { %v994_v56 = vpop.permute.xlu1 %993  ;;  %v701_v61 = vpop.permute.xlu0 %700 }
 0x2b8   : > { %v999_v58 = vsel %vm761_vm2, %v994_v56, 0 }
 0x2bb   : > { %v1112_v57 = vpop.permute.xlu1 %1111 }
 0x2bc   : > { %1766 = vmatmul.mubr.msk.bf16.vlgmr.msra.gmra.mxu1 %vm761_vm2, %v872_v52  ;;  %v1117_v62 = vsel %vm761_vm2, %v1112_v57, 0 }
 0x2bd   : > { %1776 = vmatpush3.bf16.xpose.msra.mxu1 %v999_v58  ;;  %1777 = vmatprep.mubr.msk.bf16.mxu1 %vm2102_vm1, %v2101_v16 }
 0x2be   : > { %1787 = vmatprep.subr.bf16.mxu1 %v2101_v16 }
 0x2bf   : > { %v703_v60 = vpop.permute.xlu1 %702 }
 0x2c0   : > { %1744 = vmatpush3.bf16.msra.mxu0 %v703_v60 }
 0x2c1   : > { %1745 = vmatprep.subr.bf16.mxu0 %v2101_v16 }
 0x2c4   : > { %1746 = vmatpush3.bf16.msra.mxu0 %v701_v61  ;;  %1778 = vmatmul.mubr.msk.bf16.vlgmr.msra.gmra.mxu1 %vm761_vm2, %v992_v55 }
 0x2c5   : > { %1788 = vmatpush3.bf16.xpose.msra.mxu1 %v1117_v62  ;;  %1789 = vmatprep.mubr.msk.bf16.mxu1 %vm2102_vm1, %v2101_v16 }
 0x2c6   : > { %1757 = vmatprep.subr.bf16.mxu0 %v2101_v16  ;;  %1799 = vmatprep.subr.bf16.mxu1 %v2101_v16 }
 0x2c7   : > { %1748 = vmatmul.mubr.msk.bf16.vlgmr.msra.gmra.mxu0 %vm536_vm0, %v581_v37 }
 0x2c8   : > { %1759 = vmatprep.mubr.msk.bf16.mxu0 %vm2102_vm1, %v2101_v16 }
 0x2cc   : > { %1790 = vmatmul.mubr.msk.bf16.vlgmr.msra.gmra.mxu1 %vm761_vm2, %v1110_v59 }
 0x2cd   : > { %1803 = vmatprep.mubr.msk.bf16.mxu1 %vm2102_vm1, %v2101_v16 }
 0x309   : > { %v802_v3 = vpop.f32.mrf.mxu1 }
 0x30a   : > { %v808_v6 = vmul.f32 0.35355338, %v802_v3 }
 0x30b   : > { %v1755_v7 = vpop.f32.mrf.mxu1 }
 0x30c   : > { %v809_v8 = vadd.f32 %v808_v6, %v760_v5 }
 0x30d   : > { %v805_v9 = vpop.f32.mrf.mxu1 }
 0x30e   : > { %v810_v10 = vsel %vm761_vm2, %v809_v8, -inf }
 0x30f   : > { %811 = vmax.xlane.f32.xlu1 %v810_v10  ;;  %v1756_v11 = vpop.f32.mrf.mxu1 }
 0x320   : > { %706 = vrot.lane.b32.xlu1 %v2327_v17, %s2106_s15 }
 0x37c   : > { %v916_v12 = vpop.f32.mrf.mxu1 }
 0x37d   : > { %v922_v13 = vmul.f32 0.35355338, %v916_v12 }
 0x37e   : > { %v1767_v14 = vpop.f32.mrf.mxu1 }
 0x37f   : > { %v923_v15 = vadd.f32 %v922_v13, %v760_v5 }
 0x380   : > { %v919_v18 = vpop.f32.mrf.mxu1 }
 0x381   : > { %v924_v19 = vsel %vm761_vm2, %v923_v15, -inf }
 0x382   : > { %925 = vmax.xlane.f32.xlu0 %v924_v19  ;;  %v1768_v20 = vpop.f32.mrf.mxu1 }
 0x384   : > { %v1035_v21 = vpop.f32.mrf.mxu1 }
 0x385   : > { %v1041_v22 = vmul.f32 0.35355338, %v1035_v21 }
 0x386   : > { %v1779_v23 = vpop.f32.mrf.mxu1 }
 0x387   : > { %v743_v24 = vpop.f32.mrf.mxu0  ;;  %v1042_v25 = vadd.f32 %v1041_v22, %v760_v5 }
 0x388   : > { %v1038_v26 = vpop.f32.mrf.mxu1 }
 0x389   : > { %v1749_v27 = vpop.f32.mrf.mxu0  ;;  %v1043_v28 = vsel %vm761_vm2, %v1042_v25, -inf }
 0x38a   : > { %1044 = vmax.xlane.f32.xlu0 %v1043_v28  ;;  %v1780_v17 = vpop.f32.mrf.mxu1 }
 0x38b   : > { %v746_v29 = vpop.f32.mrf.mxu0 }
 0x38c   : > { %v1153_v30 = vpop.f32.mrf.mxu1  ;;  %v1924_v29 = vld [vmem:[%s2539_s6 + $0x8] sm:$0xff]  }
 0x38d   : > { %v1159_v31 = vmul.f32 0.35355338, %v1153_v30  ;;  %v1750_v32 = vpop.f32.mrf.mxu0  ;;  %1800 = vmatpush3.bf16.msra.mxu1 %v1924_v29 }
 0x38e   : > { %v1791_v33 = vpop.f32.mrf.mxu1  ;;  %1801 = vmatprep.subr.bf16.mxu1 %v2101_v16 }
 0x38f   : > { %v1160_v34 = vadd.f32 %v1159_v31, %v760_v5  ;;  %v1925_v31 = vld [vmem:[%s2539_s6] sm:$0xff]  }
 0x390   : > { %v1156_v35 = vpop.f32.mrf.mxu1 }
 0x391   : > { %v1161_v36 = vsel %vm761_vm2, %v1160_v34, -inf  ;;  %1802 = vmatpush3.bf16.msra.mxu1 %v1925_v31  ;;  %v1682_v31 = vld [vmem:[%s2546_s13] ss:$0 sm:$0xff] }
 0x392   : > { %1162 = vmax.xlane.f32.xlu0 %v1161_v36  ;;  %v1792_v37 = vpop.f32.mrf.mxu1  ;;  %1815 = vmatprep.subr.bf16.mxu1 %v2101_v16 }
 0x398   : > { %v812_v38 = vpop.xlane.xlu1 %811 }
 0x399   : > { %v813_v39 = vsub.f32 %v809_v8, %v812_v38 }
 0x39b   : > { %v814_v40 = vmul.f32 1.442695, %v813_v39 }
 0x39c   : > { %v707_v41 = vpop.permute.xlu1 %706 }
 0x39d   : > { %1940 = vpow2.f32 %v814_v40  ;;  %v744_v42 = vadd.f32 %v743_v24, %v707_v41 }
 0x39f   : > { %v751_v43 = vpack.c.bf16 %v744_v42, %v744_v42 }
 0x3a1   : > { %937 = vrot.lane.b32.xlu1 %v751_v43, %s2103_s28  ;;  %v827_v44 = vsel %vm825_vm4, %v751_v43, 0  ;;  %s2486_s28 = scalar_lea.hbm %s2547_s14, %s1684_s26 }
 0x3a2   : > { %1758 = vmatpush3.bf16.msra.mxu0 %v827_v44 }
 0x3a3   : > { %1769 = vmatprep.subr.bf16.mxu0 %v2101_v16 }
 0x3a5   : > { %1173 = vrot.lane.b32.xlu1 %v751_v43, %s2105_s20  ;;  %s517_s20 = sand.u32 1, %s2080_s30  }
 0x3a6   : > { %s1645_s15 = sshll.u32 %s517_s20, 3  ;;  %s1517_s16 = scalar_lea.sflag [#allocation5], %s517_s20 }
 0x3a7   : > { %s519_s27 = scalar_lea.vmem [#allocation8], %s1645_s15  ;;  %s2111_s15 = smov [#allocation8]  }
 0x3a8   : > { %s1531_s24 = sshll.u32 %s519_s27, 4  ;;  %s2488_s24 = int_to_ptr.vmem [resolvable:$true] %s1531_s24 }
 0x3aa   : > { %v1941_v45 = vpop.eup %1940 }
 0x3ab   : > { %v816_v46 = vsel %vm761_vm2, %v1941_v45, 0.0 }
 0x3ac   : > { %817 = vadd.xlane.f32.xlu0 %v816_v46 }
 0x40b   : > { %v926_v47 = vpop.xlane.xlu0 %925 }
 0x40c   : > { %v927_v48 = vsub.f32 %v923_v15, %v926_v47 }
 0x40e   : > { %v928_v49 = vmul.f32 1.442695, %v927_v48 }
 0x410   : > { %1942 = vpow2.f32 %v928_v49 }
 0x413   : > { %v1045_v50 = vpop.xlane.xlu0 %1044  ;;  %v938_v2 = vpop.permute.xlu1 %937 }
 0x414   : > { %v1046_v51 = vsub.f32 %v1042_v25, %v1045_v50  ;;  %v943_v4 = vsel %vm825_vm4, %v938_v2, 0  ;;  %v1669_v2 = vld [vmem:[#allocation3] ss:$0 sm:$0xff] }
 0x416   : > { %v1047_v52 = vmul.f32 1.442695, %v1046_v51 }
 0x417   : > { %v1174_v15 = vpop.permute.xlu1 %1173 }
 0x418   : > { %1944 = vpow2.f32 %v1047_v52  ;;  %v1179_v19 = vsel %vm825_vm4, %v1174_v15, 0 }
 0x41b   : > { %v1163_v53 = vpop.xlane.xlu0 %1162 }
 0x41c   : > { %v1164_v54 = vsub.f32 %v1160_v34, %v1163_v53 }
 0x41d   : > { %v1943_v55 = vpop.eup %1942 }
 0x41e   : > { %v1165_v56 = vmul.f32 1.442695, %v1164_v54  ;;  %v930_v57 = vsel %vm761_vm2, %v1943_v55, 0.0 }
 0x41f   : > { %931 = vadd.xlane.f32.xlu0 %v930_v57 }
 0x420   : > { %1946 = vpow2.f32 %v1165_v56 }
 0x425   : > { %v1945_v58 = vpop.eup %1944 }
 0x426   : > { %v1049_v59 = vsel %vm761_vm2, %v1945_v58, 0.0 }
 0x427   : > { %1050 = vadd.xlane.f32.xlu0 %v1049_v59 }
 0x42d   : > { %v1947_v60 = vpop.eup %1946 }
 0x42e   : > { %v1167_v61 = vsel %vm761_vm2, %v1947_v60, 0.0 }
 0x42f   : > { %1168 = vadd.xlane.f32.xlu0 %v1167_v61 }
 0x435   : > { %v818_v62 = vpop.xlane.xlu0 %817 }
 0x436   : > { %1948 = vrcp.f32 %v818_v62 }
 0x443   : > { %v1949_v63 = vpop.eup %1948 }
 0x444   : > { %v820_v1 = vmul.f32 %v1949_v63, %v1941_v45  ;;  %v1664_v45 = vld [vmem:[%s2540_s7] ss:$0 sm:$0xff] }
 0x445   : > { %1055 = vrot.lane.b32.xlu0 %v751_v43, %s2104_s19  ;;  %v1668_v63 = vld [vmem:[%s2541_s8] ss:$0 sm:$0xff]  ;;  %s2012_s19 = scalar_lea.vmem %s2488_s24, 128 }
 0x446   : > { %v821_v3 = vpack.c.bf16 %v820_v1, %v820_v1  ;;  %p2013_p8 = scmp.ne.s32.totalorder %s2488_s24, %s2012_s19 }
 0x448   : > { %1760 = vmatmul.mubr.msk.bf16.vlgmr.msra.gmra.mxu0 %vm761_vm2, %v821_v3  ;;  %p2014_p11 = pnand %p2013_p8, %p2566_p10 }
 0x449   : > { %1770 = vmatpush3.bf16.msra.mxu0 %v943_v4  ;;  %1771 = vmatprep.mubr.msk.bf16.mxu0 %vm2102_vm1, %v2101_v16 }
 0x44a   : > { %1781 = vmatprep.subr.bf16.mxu0 %v2101_v16  ;;  %p2015_p13 = pneg %p2014_p11 }
 0x4a8   : > { %v932_v5 = vpop.xlane.xlu0 %931 }
 0x4a9   : > { %1950 = vrcp.f32 %v932_v5 }
 0x4b0   : > { %v1051_v6 = vpop.xlane.xlu0 %1050 }
 0x4b1   : > { %1952 = vrcp.f32 %v1051_v6  ;;  %v1928_v6 = vld [vmem:[%s2545_s12 + $0x38] sm:$0xff]  }
 0x4b6   : > { %v1951_v7 = vpop.eup %1950 }
 0x4b7   : > { %v934_v8 = vmul.f32 %v1951_v7, %v1943_v55  ;;  %v1929_v7 = vld [vmem:[%s2545_s12 + $0x30] sm:$0xff]  }
 0x4b8   : > { %v1169_v9 = vpop.xlane.xlu0 %1168 }
 0x4b9   : > { %1954 = vrcp.f32 %v1169_v9  ;;  %v935_v10 = vpack.c.bf16 %v934_v8, %v934_v8  ;;  %v1930_v8 = vld [vmem:[%s2545_s12 + $0x28] sm:$0xff]   ;;  %v1931_v9 = vld [vmem:[%s2545_s12 + $0x20] sm:$0xff]  }
 0x4bb   : > { %1772 = vmatmul.mubr.msk.bf16.vlgmr.msra.gmra.mxu0 %vm761_vm2, %v935_v10  ;;  %v1932_v10 = vld [vmem:[%s2545_s12 + $0x18] sm:$0xff]  }
 0x4bc   : > { %v1056_v11 = vpop.permute.xlu0 %1055  ;;  %1783 = vmatprep.mubr.msk.bf16.mxu0 %vm2102_vm1, %v2101_v16 }
 0x4bd   : > { %v1061_v12 = vsel %vm825_vm4, %v1056_v11, 0  ;;  %v1933_v11 = vld [vmem:[%s2545_s12 + $0x10] sm:$0xff]  }
 0x4be   : > { %v1953_v13 = vpop.eup %1952  ;;  %1782 = vmatpush3.bf16.msra.mxu0 %v1061_v12  ;;  %v1934_v12 = vld [vmem:[%s2545_s12 + $0x8] sm:$0xff]  }
 0x4bf   : > { %1793 = vmatprep.subr.bf16.mxu0 %v2101_v16  ;;  %v1053_v14 = vmul.f32 %v1953_v13, %v1945_v58  ;;  %v1926_v58 = vld [vmem:[%s2543_s10 + $0x8] sm:$0xff]   ;;  %v1935_v13 = vld [vmem:[%s2545_s12] sm:$0xff]  }
 0x4c1   : > { %v1054_v18 = vpack.c.bf16 %v1053_v14, %v1053_v14  ;;  %v1670_v14 = vld [vmem:[#allocation6] ss:$0 sm:$0xff] }
 0x4c3   : > { %1784 = vmatmul.mubr.msk.bf16.vlgmr.msra.gmra.mxu0 %vm761_vm2, %v1054_v18 }
 0x4c4   : > { %1794 = vmatpush3.bf16.msra.mxu0 %v1179_v19  ;;  %1795 = vmatprep.mubr.msk.bf16.mxu0 %vm2102_vm1, %v2101_v16 }
 0x4c5   : > { %1807 = vmatprep.subr.bf16.mxu0 %v2101_v16 }
 0x4c6   : > { %v1955_v20 = vpop.eup %1954 }
 0x4c7   : > { %v1171_v21 = vmul.f32 %v1955_v20, %v1947_v60 }
 0x4c9   : > { %v1172_v22 = vpack.c.bf16 %v1171_v21, %v1171_v21 }
 0x4cb   : > { %1796 = vmatmul.mubr.msk.bf16.vlgmr.msra.gmra.mxu0 %vm761_vm2, %v1172_v22 }
 0x4cc   : > { %1811 = vmatprep.mubr.msk.bf16.mxu0 %vm2102_vm1, %v2101_v16  ;;  %1808 = vmatpush3.bf16.msra.mxu0 %v1926_v58 }
 0x4cd   : > { %1809 = vmatprep.subr.bf16.mxu0 %v2101_v16 }
 0x508   : > { %v863_v23 = vpop.f32.mrf.mxu0 }
 0x509   : > { %869 = vst.msk [vmem:[#allocation2] sm:$0xff] %vm761_vm2, %v863_v23 }
 0x50a   : > { %v1761_v24 = vpop.f32.mrf.mxu0 }
 0x50c   : > { %v866_v25 = vpop.f32.mrf.mxu0 }
 0x50e   : > { %v1762_v26 = vpop.f32.mrf.mxu0 }
 0x57b   : > { %v979_v27 = vpop.f32.mrf.mxu0 }
 0x57c   : > { %986 = vrot.lane.b32.xlu1 %v979_v27, %s2108_s17  ;;  %s2016_s17 = sshll.u32 %s2111_s15, 4  ;;  %s2017_s17 = int_to_ptr.vmem [resolvable:$false] %s2016_s17 }
 0x57d   : > { %v1773_v28 = vpop.f32.mrf.mxu0  ;;  %s2018_s25 = scalar_lea.vmem %s2017_s17, 256  ;;  %p2019_p0 = scmp.lt.s32.totalorder %s2488_s24, %s2017_s17 }
 0x57e   : > { %p2020_p6 = scmp.lt.s32.totalorder %s2018_s25, %s2012_s19 }
 0x57f   : > { %v982_v17 = vpop.f32.mrf.mxu0 }
 0x580   : > { %p2021_p7 = por %p2020_p6, %p2019_p0 }
 0x581   : > { %v1774_v30 = vpop.f32.mrf.mxu0 }
 0x582   : > { %p2022_p9 = pnand %p2021_p7, %p2015_p13 }
 0x583   : > { %v1097_v32 = vpop.f32.mrf.mxu0 }
 0x584   : > { %1104 = vrot.lane.b32.xlu1 %v1097_v32, %s2109_s22 }
 0x585   : > { %v1785_v33 = vpop.f32.mrf.mxu0 }
 0x587   : > { %v1100_v34 = vpop.f32.mrf.mxu0 }
 0x589   : > { %v1786_v35 = vpop.f32.mrf.mxu0 }
 0x58b   : > { %v1215_v36 = vpop.f32.mrf.mxu0 }
 0x58c   : > { %1222 = vrot.lane.b32.xlu1 %v1215_v36, %s2110_s21 }
 0x58d   : > { %v1797_v37 = vpop.f32.mrf.mxu0 }
 0x58f   : > { %v1218_v38 = vpop.f32.mrf.mxu0 }
 0x591   : > { %v1798_v39 = vpop.f32.mrf.mxu0 }
 0x5ee   : > { %v987_v40 = vpop.permute.xlu1 %986 }
 0x5ef   : > { %990 = vst.msk [vmem:[#allocation2] sm:$0xff] %vm989_vm5, %v987_v40 }
 0x5f6   : > { %v1105_v41 = vpop.permute.xlu1 %1104 }
 0x5f7   : > { %1108 = vst.msk [vmem:[#allocation2] sm:$0xff] %vm1107_vm6, %v1105_v41 }
 0x5fe   : > { %v1223_v42 = vpop.permute.xlu1 %1222 }
 0x5ff   : > { %1226 = vst.msk [vmem:[#allocation2] sm:$0xff] %vm1225_vm7, %v1223_v42 }
 0x606   : > { %v1227_v43 = vld [vmem:[#allocation2] sm:$0xff] }
 0x607   : > { %v1228_v44 = vpack.c.bf16 %v1227_v43, %v1227_v43 }
 0x609   : > { %1804 = vmatmul.mubr.msk.bf16.vlgmr.msra.gmra.mxu1 %vm536_vm0, %v1228_v44 }
 0x60a   : > { %1831 = vmatprep.mubr.msk.bf16.mxu1 %vm2102_vm1, %v2101_v16  ;;  %1816 = vmatpush3.bf16.msra.mxu1 %v1928_v6 }
 0x60b   : > { %1817 = vmatprep.subr.bf16.mxu1 %v2101_v16 }
 0x60e   : > { %1818 = vmatpush3.bf16.msra.mxu1 %v1929_v7 }
 0x60f   : > { %1819 = vmatprep.subr.bf16.mxu1 %v2101_v16 }
 0x612   : > { %1820 = vmatpush3.bf16.msra.mxu1 %v1930_v8 }
 0x613   : > { %1821 = vmatprep.subr.bf16.mxu1 %v2101_v16 }
 0x616   : > { %1822 = vmatpush3.bf16.msra.mxu1 %v1931_v9 }
 0x617   : > { %1823 = vmatprep.subr.bf16.mxu1 %v2101_v16 }
 0x61a   : > { %1824 = vmatpush3.bf16.msra.mxu1 %v1932_v10 }
 0x61b   : > { %1825 = vmatprep.subr.bf16.mxu1 %v2101_v16 }
 0x61e   : > { %1826 = vmatpush3.bf16.msra.mxu1 %v1933_v11 }
 0x61f   : > { %1827 = vmatprep.subr.bf16.mxu1 %v2101_v16 }
 0x622   : > { %1828 = vmatpush3.bf16.msra.mxu1 %v1934_v12 }
 0x623   : > { %1829 = vmatprep.subr.bf16.mxu1 %v2101_v16 }
 0x626   : > { %1830 = vmatpush3.bf16.msra.mxu1 %v1935_v13 }
 0x6c9   : > { %v1289_v46 = vpop.f32.mrf.mxu1 }
 0x6ca   : > { %v1290_v47 = vadd.f32 %v1664_v45, %v1289_v46 }
 0x6cb   : > { %v1805_v48 = vpop.f32.mrf.mxu1 }
 0x6cc   : > { %v2429_v49 = vadd.f32 %v1290_v47, %v2294_v0  ;;  %v1927_v0 = vld [vmem:[%s2543_s10] sm:$0xff]  }
 0x6cd   : > { %v1292_v50 = vpop.f32.mrf.mxu1  ;;  %1810 = vmatpush3.bf16.msra.mxu0 %v1927_v0 }
 0x6ce   : > { %v1298_v51 = vsel %vm536_vm0, %v2429_v49, 0.0 }
 0x6cf   : > { %1299 = vadd.xlane.f32.xlu1 %v1298_v51  ;;  %v1806_v52 = vpop.f32.mrf.mxu1 }
 0x758   : > { %v1300_v53 = vpop.xlane.xlu1 %1299 }
 0x759   : > { %v1301_v54 = vmul.f32 0.03125, %v1300_v53 }
 0x75b   : > { %v1302_v55 = vsub.f32 %v2429_v49, %v1301_v54 }
 0x75d   : > { %v1303_v56 = vmul.f32 %v1302_v55, %v1302_v55 }
 0x75f   : > { %v1304_v57 = vsel %vm536_vm0, %v1303_v56, 0.0 }
 0x760   : > { %1305 = vadd.xlane.f32.xlu0 %v1304_v57 }
 0x7e9   : > { %v1306_v59 = vpop.xlane.xlu0 %1305 }
 0x7ea   : > { %v1307_v60 = vmul.f32 0.03125, %v1306_v59 }
 0x7ec   : > { %v1308_v61 = vadd.f32 1e-05, %v1307_v60 }
 0x7ee   : > { %1956 = vrsqrt.f32 %v1308_v61 }
 0x7fb   : > { %v1957_v62 = vpop.eup %1956 }
 0x7fc   : > { %v1310_v1 = vmul.f32 %v1957_v62, %v1302_v55 }
 0x7fe   : > { %v1317_v3 = vmul.f32 %v1668_v63, %v1310_v1 }
 0x800   : > { %v1324_v4 = vadd.f32 %v1669_v2, %v1317_v3 }
 0x802   : > { %v1325_v5 = vpack.c.bf16 %v1324_v4, %v1324_v4 }
 0x804   : > { %1812 = vmatmul.mubr.msk.bf16.vlgmr.msra.gmra.mxu0 %vm536_vm0, %v1325_v5 }
 0x8c4   : > { %v1386_v15 = vpop.f32.mrf.mxu0 }
 0x8c5   : > { %v1387_v18 = vadd.f32 %v1670_v14, %v1386_v15 }
 0x8c6   : > { %v1813_v19 = vpop.f32.mrf.mxu0 }
 0x8c7   : > { %v1393_v20 = vmul.f32 0.044715, %v1387_v18  ;;  %v1392_v28 = vmul.f32 0.5, %v1387_v18 }
 0x8c8   : > { %v1389_v21 = vpop.f32.mrf.mxu0 }
 0x8c9   : > { %v1394_v22 = vmul.f32 %v1393_v20, %v1387_v18 }
 0x8ca   : > { %v1814_v23 = vpop.f32.mrf.mxu0 }
 0x8cb   : > { %v1395_v24 = vmul.f32 %v1394_v22, %v1387_v18 }
 0x8cd   : > { %v1396_v25 = vadd.f32 %v1395_v24, %v1387_v18 }
 0x8cf   : > { %v1397_v26 = vmul.f32 0.7978846, %v1396_v25 }
 0x8d1   : > { %1958 = vtanh.f32 %v1397_v26 }
 0x8de   : > { %v1959_v27 = vpop.eup %1958 }
 0x8df   : > { %v1399_v17 = vadd.f32 1.0, %v1959_v27 }
 0x8e1   : > { %v1400_v29 = vmul.f32 %v1399_v17, %v1392_v28 }
 0x8e3   : > { %v1401_v16 = vpack.c.bf16 %v1400_v29, %v1400_v29 }
 0x8e5   : > { %1832 = vmatmul.mubr.bf16.vlgmr.msra.gmra.mxu1 %v1401_v16 }
 0x9a5   : > { %v1500_v30 = vpop.f32.mrf.mxu1 }
 0x9a6   : > { %v1506_v32 = vadd.f32 %v1500_v30, %v2429_v49 }
 0x9a7   : > { %v1833_v33 = vpop.f32.mrf.mxu1 }
 0x9a8   : > { %v1514_v34 = vadd.f32 %v1682_v31, %v1506_v32 }
 0x9a9   : > { %v1503_v35 = vpop.f32.mrf.mxu1 }
 0x9aa   : > { %1515 = vst.msk [vmem:[%s519_s27] sm:$0xff] %vm536_vm0, %v1514_v34 }
 0x9ab   : > { %v1834_v36 = vpop.f32.mrf.mxu1 }
 0x9ac   : > { %2025 = shalt.err (!%p2022_p9)
}
 0x9ad   : > { %s2026_s26 = scalar_lea.hbm %s2486_s28, 128  ;;  %s2030_s22 = scalar_lea.hbm %s2547_s14, 256 }
 0x9ae   : > { %p2027_p12 = scmp.ne.s32.totalorder %s2486_s28, %s2026_s26  ;;  %p2031_p5 = scmp.lt.s32.totalorder %s2486_s28, %s2547_s14 }
 0x9af   : > { %p2032_p3 = scmp.lt.s32.totalorder %s2030_s22, %s2026_s26 }
 0x9b0   : > { %p2028_p1 = pnand %p2027_p12, %p2566_p10 }
 0x9b1   : > { %p2033_p4 = por %p2032_p3, %p2031_p5 }
 0x9b2   : > { %p2029_p2 = pneg %p2028_p1 }
 0x9b4   : > { %p2034_p8 = pnand %p2033_p4, %p2029_p2 }
 0x9b6   : > { %2037 = shalt.err (!%p2034_p8)
}
 0x9b7   : > { %1843 = dma.vmem_to_hbm [thread:$0]  (%p2566_p10), %s2488_s24, 128, %s2486_s28, %s1517_s16  }
 0x9b8 PF: > { %s2567_s19 = sld [smem:[#allocation15_spill]]  ;;  %p1860_p11 = scmp.ge.s32.totalorder %s2096_s18, 2 }
 0x9b9   : > { %s1543_s17 = sand.u32 1, %s2076_s29  }
 0x9ba   : > { %s1544_s25 = scalar_lea.sflag [#allocation5], %s1543_s17 }
 0x9be   : > { %p2568_p13 = scmp.ne.s32.totalorder %s2567_s19, 0 }
 0x9c0   : > { %p1853_p0 = pnand %p1860_p11, %p2568_p13 }
 0x9c2   : > { %p1854_p6 = pneg %p1853_p0 }
 0x9c4   : > { %2071 = dma.done.wait (%p1854_p6), %s1544_s25, 128  }
 0x9c5   : > { %2073 = vsyncadd (%p1854_p6), %s1544_s25, 4294967168  ;;  %s29_s18 = sadd.s32 1, %s2096_s18   ;;  %s2569_s23 = sld [smem:[#allocation12_spill]] }
 0x9c6   : > { %p26_p7 = scmp.ge.s32.totalorder %s29_s18, 4   ;;  %s2570_s15 = sld [smem:[#allocation16_spill]] }
 0x9c7   : > { %s2571_s16 = sld [smem:[#allocation13_spill]]  ;;  %s2573_s29 = smov %s2080_s30 }
 0x9c8   : > { %s2572_s17 = sld [smem:[#allocation14_spill]]  ;;  %28 = sbr.rel (!%p26_p7) target bundleno = 6 (0x6), region = 123 }
 0x9cb   : > { %s2574_s30 = smov %s2569_s23 }
 0x9cd   :  { %1549 = vsyncpa [#allocation4], 1 }
 0x9ce   :  { %1551 = vsyncpa [#allocation4 + $0x1], 1 }
 0x9cf   :  { %1552 = vsyncpa [#allocation7], 1 }
 0x9d0   :  { %1553 = vsyncpa [#allocation5], 1 }
 0x9d1   :  { %1555 = vsyncpa [#allocation5 + $0x1], 1 }

</bundles_post_ra>
